<compile_context>
chip_gen: v6e
topology: v6e:2x2x1
jax: 0.10.0
libtpu: 0.0.40
codegen_flags: <defaults>
</compile_context>

<pallas_src>
import functools
import math

import jax
import jax.numpy as jnp
from jax import lax
from jax.experimental import pallas as pl
from jax.experimental.pallas import tpu as pltpu

LN_EPS = 1e-5
MASK_VALUE = -1e30  # finite sentinel: safe for tiled online softmax


def _erf(x):
    # Abramowitz & Stegun 7.1.26 polynomial (|err| < 1.5e-7): matches exact
    # erf at fp32 precision without depending on an erf lowering in Mosaic.
    a1, a2, a3, a4, a5 = (0.254829592, -0.284496736, 1.421413741,
                          -1.453152027, 1.061405429)
    p = 0.3275911
    s = jnp.sign(x)
    ax = jnp.abs(x)
    t = 1.0 / (1.0 + p * ax)
    poly = ((((a5 * t + a4) * t + a3) * t + a2) * t + a1) * t
    return s * (1.0 - poly * jnp.exp(-ax * ax))


def _gelu_exact(x):
    # F.gelu default = exact (erf-based) GELU.  Kept exact to preserve the
    # PyTorch module's forward semantics (tanh approx would be cheaper VALU).
    return 0.5 * x * (1.0 + _erf(x * 0.7071067811865476))


def _layernorm(x, g, b):
    x = x.astype(jnp.float32)
    mu = jnp.mean(x, axis=-1, keepdims=True)
    var = jnp.mean((x - mu) ** 2, axis=-1, keepdims=True)
    return ((x - mu) * lax.rsqrt(var + LN_EPS) * g.astype(jnp.float32)
            + b.astype(jnp.float32))


@functools.lru_cache(maxsize=None)
def _weight_buffering():
    """pl.Buffered(1) for grid-invariant weight blocks, if supported.

    Probes a tiny kernel once; falls back to default (double) buffering if
    single-buffering is rejected by the installed Pallas version.
    """
    try:
        mode = pl.Buffered(1)

        def _probe(w_ref, o_ref):
            o_ref[...] = w_ref[...] + 1.0

        f = pl.pallas_call(
            _probe,
            out_shape=jax.ShapeDtypeStruct((8, 128), jnp.float32),
            grid=(2,),
            in_specs=[pl.BlockSpec((8, 128), lambda i: (0, 0),
                                   pipeline_mode=mode)],
            out_specs=pl.BlockSpec((8, 128), lambda i: (0, 0)),
        )
        jax.block_until_ready(f(jnp.zeros((8, 128), jnp.float32)))
        return mode
    except Exception:
        return None


# ----------------------------- Kernel A ------------------------------------
def ln_qkv_split_kernel(x_ref, g_ref, b_ref, w_ref, wb_ref,
                        q_ref, k_ref, v_ref, *, n_head, head_dim):
    C = n_head * head_dim
    y = _layernorm(x_ref[0], g_ref[...], b_ref[...])               # (Tr, C) f32
    qkv = jnp.dot(y.astype(w_ref.dtype), w_ref[...],
                  preferred_element_type=jnp.float32)              # (Tr, 3C)
    qkv = qkv + wb_ref[...].astype(jnp.float32)
    # Head split in-kernel (lane slices hide under the big matmul) so the
    # outputs are already head-major (B,H,T,hd) -> no wrapper transpose.
    for h in range(n_head):
        lo = h * head_dim
        hi = lo + head_dim
        q_ref[0, h] = qkv[:, lo:hi].astype(q_ref.dtype)
        k_ref[0, h] = qkv[:, C + lo:C + hi].astype(k_ref.dtype)
        v_ref[0, h] = qkv[:, 2 * C + lo:2 * C + hi].astype(v_ref.dtype)


# ----------------------------- Kernel B ------------------------------------
def attn_mlp_kernel(x_ref, q_ref, k_ref, v_ref,
                    wp_ref, bp_ref, ln2g_ref, ln2b_ref,
                    w1_ref, b1_ref, w2_ref, b2_ref,
                    o_ref, m_sc, l_sc, acc_sc, mrg_sc,
                    *, n_head, head_dim, block_q, block_k):
    qi = pl.program_id(1)
    ki = pl.program_id(2)
    nk = pl.num_programs(2)

    @pl.when(ki == 0)
    def _init():
        m_sc[...] = jnp.full(m_sc.shape, MASK_VALUE, m_sc.dtype)
        l_sc[...] = jnp.zeros(l_sc.shape, l_sc.dtype)
        acc_sc[...] = jnp.zeros(acc_sc.shape, acc_sc.dtype)

    def _accum(masked):
        q = q_ref[0]                       # (H, Tq, hd); scale folded into W_q
        k = k_ref[0]                       # (H, Tk, hd)
        v = v_ref[0]                       # (H, Tk, hd)
        s = jnp.einsum("hqd,hkd->hqk", q, k,
                       preferred_element_type=jnp.float32)         # (H,Tq,Tk)
        if masked:
            # Only the diagonal tile needs the in-tile causal mask.
            qpos = qi * block_q + lax.broadcasted_iota(
                jnp.int32, (block_q, block_k), 0)
            kpos = ki * block_k + lax.broadcasted_iota(
                jnp.int32, (block_q, block_k), 1)
            s = jnp.where((kpos <= qpos)[None, :, :], s, MASK_VALUE)
        m_prev = m_sc[...]
        m_new = jnp.maximum(m_prev, jnp.max(s, axis=-1, keepdims=True))
        alpha = jnp.exp(m_prev - m_new)
        p = jnp.exp(s - m_new)
        l_sc[...] = alpha * l_sc[...] + jnp.sum(p, axis=-1, keepdims=True)
        acc_sc[...] = alpha * acc_sc[...] + jnp.einsum(
            "hqk,hkd->hqd", p.astype(v.dtype), v,
            preferred_element_type=jnp.float32)
        m_sc[...] = m_new

    # Tiles strictly above the diagonal are skipped entirely (and, thanks to
    # the clamped K/V index_map, never DMA'd either).
    @pl.when(ki < qi)
    def _off_diag():
        _accum(masked=False)

    @pl.when(ki == qi)
    def _diag():
        _accum(masked=True)

    @pl.when(ki == nk - 1)
    def _epilogue():
        # Softmax normalization on the EUP (free slot), not a VALU division.
        inv_l = pl.reciprocal(l_sc[...], approx=True)               # (H,Tq,1)
        acc = acc_sc[...]
        # Merge heads into a (Tq, C) slab with H cheap lane-slice stores, then
        # do ONE K=C projection matmul (keeps the deep MXU full on v6e/v7x).
        for h in range(n_head):
            mrg_sc[:, h * head_dim:(h + 1) * head_dim] = acc[h] * inv_l[h]
        attn = mrg_sc[...]                                          # (Tq, C)
        proj = jnp.dot(attn.astype(wp_ref.dtype), wp_ref[...],
                       preferred_element_type=jnp.float32)

        x0 = x_ref[0].astype(jnp.float32)                           # (Tq, C)
        x1 = x0 + proj + bp_ref[...].astype(jnp.float32)

        z = _layernorm(x1, ln2g_ref[...], ln2b_ref[...])
        h1 = jnp.dot(z.astype(w1_ref.dtype), w1_ref[...],
                     preferred_element_type=jnp.float32)
        h1 = _gelu_exact(h1 + b1_ref[...].astype(jnp.float32))
        h2 = jnp.dot(h1.astype(w2_ref.dtype), w2_ref[...],
                     preferred_element_type=jnp.float32)
        h2 = h2 + b2_ref[...].astype(jnp.float32)

        o_ref[0] = (x1 + h2).astype(o_ref.dtype)


# ------------------------------ wrapper ------------------------------------
def _pick_tile(n, preferred=(512, 256, 128)):
    for t in preferred:
        if n >= t and n % t == 0:
            return t
    # Hardened fallback: largest multiple-of-8 divisor <= 256 so awkward
    # sequence lengths still pipeline instead of becoming one huge block.
    for t in range(min(n, 256), 0, -8):
        if t % 8 == 0 and n % t == 0:
            return t
    return n  # tiny / indivisible: single full block (legal via full-dim rule)


def prepare_params(params, n_head, weight_dtype=jnp.bfloat16):
    """One-time parameter preparation (NOT per forward call):
    fuse QKV weights, fold 1/sqrt(head_dim) into Q in fp32, cast weights."""
    (ln1g, ln1b, wq, bq, wk, bk, wv, bv, wp, bp,
     ln2g, ln2b, w1, b1, w2, b2) = params
    C = wq.shape[0]
    assert C % n_head == 0
    scale = 1.0 / math.sqrt(C // n_head)
    # Fold the attention scale BEFORE any dtype cast (avoids double rounding).
    wqkv = jnp.concatenate([wq * scale, wk, wv], axis=1).astype(weight_dtype)
    bqkv = jnp.concatenate([bq * scale, bk, bv], axis=1)   # biases stay fp32
    return dict(
        ln1g=ln1g, ln1b=ln1b,
        wqkv=wqkv, bqkv=bqkv,
        wp=wp.astype(weight_dtype), bp=bp,
        ln2g=ln2g, ln2b=ln2b,
        w1=w1.astype(weight_dtype), b1=b1,
        w2=w2.astype(weight_dtype), b2=b2)


def transformer_block(x, prepared, n_head):
    p = prepared
    B, T, C = x.shape
    assert C % n_head == 0
    H, hd = n_head, C // n_head
    wqkv, bqkv = p["wqkv"], p["bqkv"]
    qkv_dtype = wqkv.dtype
    w_item = jnp.dtype(qkv_dtype).itemsize
    mode = _weight_buffering()   # Buffered(1) for grid-invariant weights

    # -------------- Kernel A: LN1 + fused QKV + head split --------------
    Tr = _pick_tile(T)
    n_t = T // Tr

    def const_a(a):
        return pl.BlockSpec(a.shape, lambda b, i: (0,) * a.ndim,
                            pipeline_mode=mode)

    cost_a = pl.CostEstimate(
        flops=int(2 * B * T * C * 3 * C),
        transcendentals=int(B * T),
        bytes_accessed=int(4 * B * T * C
                           + w_item * 3 * C * C
                           + w_item * 3 * B * T * C))

    kernel_a = functools.partial(ln_qkv_split_kernel, n_head=H, head_dim=hd)

    q, k, v = pl.pallas_call(
        kernel_a,
        out_shape=tuple(jax.ShapeDtypeStruct((B, H, T, hd), qkv_dtype)
                        for _ in range(3)),
        grid_spec=pltpu.PrefetchScalarGridSpec(
            num_scalar_prefetch=0,
            grid=(B, n_t),
            in_specs=[
                pl.BlockSpec((1, Tr, C), lambda b, i: (b, i, 0)),
                const_a(p["ln1g"]), const_a(p["ln1b"]),
                const_a(wqkv), const_a(bqkv),
            ],
            out_specs=tuple(
                pl.BlockSpec((1, H, Tr, hd), lambda b, i: (b, 0, i, 0))
                for _ in range(3)),
        ),
        compiler_params=pltpu.CompilerParams(
            dimension_semantics=("parallel", "parallel"),
            vmem_limit_bytes=48 * 1024 * 1024),
        cost_estimate=cost_a,
    )(x, p["ln1g"], p["ln1b"], wqkv, bqkv)

    # ------ Kernel B: flash attention + proj + LN2 + MLP (+residuals) ------
    Tq = _pick_tile(T, preferred=(256, 128))
    Tk = Tq
    n_q = T // Tq
    n_k = T // Tk

    def const_b(a):
        return pl.BlockSpec(a.shape, lambda b, i, j: (0,) * a.ndim,
                            pipeline_mode=mode)

    cost_b = pl.CostEstimate(
        flops=int(B * (4 * T * T * C + 18 * T * C * C)),
        transcendentals=int(B * (H * T * T + 4 * T * C)),
        bytes_accessed=int(
            4 * 2 * B * T * C                        # x in + out (fp32)
            + w_item * B * T * C                     # q
            + w_item * B * T * C * (n_q + 1)         # k+v, ~(n_q+1)/2 reads each
            + w_item * 9 * C * C                     # wp + w1 + w2
            + 4 * 14 * C))                           # biases / ln params

    kernel_b = functools.partial(attn_mlp_kernel, n_head=H, head_dim=hd,
                                 block_q=Tq, block_k=Tk)

    out = pl.pallas_call(
        kernel_b,
        out_shape=jax.ShapeDtypeStruct((B, T, C), x.dtype),
        grid_spec=pltpu.PrefetchScalarGridSpec(
            num_scalar_prefetch=0,
            grid=(B, n_q, n_k),
            in_specs=[
                pl.BlockSpec((1, Tq, C), lambda b, i, j: (b, i, 0)),   # residual x
                pl.BlockSpec((1, H, Tq, hd),
                             lambda b, i, j: (b, 0, i, 0)),            # q
                # Clamp to the diagonal: causally-skipped (j > i) steps reuse
                # the resident block, so no wasted K/V DMA is issued.
                pl.BlockSpec((1, H, Tk, hd),
                             lambda b, i, j: (b, 0, jnp.minimum(i, j), 0)),  # k
                pl.BlockSpec((1, H, Tk, hd),
                             lambda b, i, j: (b, 0, jnp.minimum(i, j), 0)),  # v
                const_b(p["wp"]), const_b(p["bp"]),
                const_b(p["ln2g"]), const_b(p["ln2b"]),
                const_b(p["w1"]), const_b(p["b1"]),
                const_b(p["w2"]), const_b(p["b2"]),
            ],
            out_specs=pl.BlockSpec((1, Tq, C), lambda b, i, j: (b, i, 0)),
            scratch_shapes=[
                pltpu.VMEM((H, Tq, 1), jnp.float32),    # running max
                pltpu.VMEM((H, Tq, 1), jnp.float32),    # running denominator
                pltpu.VMEM((H, Tq, hd), jnp.float32),   # running numerator
                pltpu.VMEM((Tq, C), jnp.float32),       # merged heads (epilogue)
            ],
        ),
        compiler_params=pltpu.CompilerParams(
            dimension_semantics=("parallel", "parallel", "arbitrary"),
            vmem_limit_bytes=48 * 1024 * 1024),
        cost_estimate=cost_b,
    )(x, q, k, v, p["wp"], p["bp"], p["ln2g"], p["ln2b"],
      p["w1"], p["b1"], p["w2"], p["b2"])
    return out


# ---------------- pure-JAX reference (for a sanity check) ----------------
def reference_block(x, params, n_head):
    (ln1g, ln1b, wq, bq, wk, bk, wv, bv, wp, bp,
     ln2g, ln2b, w1, b1, w2, b2) = params
    B, T, C = x.shape
    hd = C // n_head

    def ln(v, g, b):
        mu = jnp.mean(v, axis=-1, keepdims=True)
        var = jnp.mean((v - mu) ** 2, axis=-1, keepdims=True)
        return (v - mu) / jnp.sqrt(var + LN_EPS) * g[0] + b[0]

    y = ln(x, ln1g, ln1b)
    q = (y @ wq + bq[0]).reshape(B, T, n_head, hd).transpose(0, 2, 1, 3)
    k = (y @ wk + bk[0]).reshape(B, T, n_head, hd).transpose(0, 2, 1, 3)
    v = (y @ wv + bv[0]).reshape(B, T, n_head, hd).transpose(0, 2, 1, 3)
    att = jnp.einsum("bhqd,bhkd->bhqk", q, k) / math.sqrt(hd)
    mask = jnp.tril(jnp.ones((T, T), bool))
    att = jnp.where(mask, att, float("-inf"))
    att = jax.nn.softmax(att, axis=-1)
    yh = jnp.einsum("bhqk,bhkd->bhqd", att, v).transpose(0, 2, 1, 3).reshape(B, T, C)
    x1 = x + (yh @ wp + bp[0])
    z = ln(x1, ln2g, ln2b)
    h = jax.nn.gelu(z @ w1 + b1[0], approximate=False)
    return x1 + (h @ w2 + b2[0])


def make_params(key, n_embd):
    ks = jax.random.split(key, 8)
    C = n_embd
    std = 0.02
    ln1g = jnp.ones((1, C), jnp.float32)
    ln1b = jnp.zeros((1, C), jnp.float32)
    ln2g = jnp.ones((1, C), jnp.float32)
    ln2b = jnp.zeros((1, C), jnp.float32)
    wq = std * jax.random.normal(ks[0], (C, C), jnp.float32)
    wk = std * jax.random.normal(ks[1], (C, C), jnp.float32)
    wv = std * jax.random.normal(ks[2], (C, C), jnp.float32)
    wp = std * jax.random.normal(ks[3], (C, C), jnp.float32)
    bq = std * jax.random.normal(ks[4], (1, C), jnp.float32)
    bk = jnp.zeros((1, C), jnp.float32)
    bv = jnp.zeros((1, C), jnp.float32)
    bp = jnp.zeros((1, C), jnp.float32)
    w1 = std * jax.random.normal(ks[5], (C, 4 * C), jnp.float32)
    b1 = std * jax.random.normal(ks[6], (1, 4 * C), jnp.float32)
    w2 = std * jax.random.normal(ks[7], (4 * C, C), jnp.float32)
    b2 = jnp.zeros((1, C), jnp.float32)
    return (ln1g, ln1b, wq, bq, wk, bk, wv, bv, wp, bp,
            ln2g, ln2b, w1, b1, w2, b2)


if __name__ == "__main__":
    B, T, C, H = 2, 8, 32, 4   # batch, seq (block_size), n_embd, n_head
    key = jax.random.PRNGKey(0)
    kx, kp = jax.random.split(key)
    x = jax.random.normal(kx, (B, T, C), jnp.float32)
    params = make_params(kp, C)

    # One-time parameter preparation (QKV fuse, scale fold, bf16 cast).
    prepared = prepare_params(params, H, weight_dtype=jnp.bfloat16)

    out = jax.block_until_ready(transformer_block(x, prepared, H))
    ref = reference_block(x, params, H)

    assert out.shape == (B, T, C)
    # bf16 weights/activations in the matmuls (fp32 accumulation) plus the
    # approx EUP reciprocal loosen the tolerance vs. the all-fp32 reference.
    err = float(jnp.max(jnp.abs(out - ref)))
    assert jnp.allclose(out, ref, rtol=2e-2, atol=2e-2), (
        f"mismatch vs reference: max err {err}")

    print("KERNEL_OK")
</pallas_src>

<mosaic_0001>
module attributes {stable_mosaic.version = 11 : i64} {
  func.func @_probe(%arg0: i32, %arg1: memref<8x128xf32, #tpu.memory_space<vmem>>, %arg2: memref<8x128xf32, #tpu.memory_space<vmem>>) attributes {dimension_semantics = [#tpu.dimension_semantics<arbitrary>], iteration_bounds = array<i64: 2>, scalar_prefetch = 0 : i64, scratch_operands = 0 : i64, tpu.core_type = #tpu.core_type<tc>, window_params = [{pipeline_mode = #tpu.pipeline_mode<synchronous>, transform_indices = @transform_0, window_bounds = array<i64: 8, 128>}, {pipeline_mode = #tpu.pipeline_mode<synchronous>, transform_indices = @transform_1, window_bounds = array<i64: 8, 128>}]} {
    %c0 = arith.constant 0 : index
    %c0_0 = arith.constant 0 : index
    %0 = vector.load %arg1[%c0, %c0_0] : memref<8x128xf32, #tpu.memory_space<vmem>>, vector<8x128xf32>
    %cst = arith.constant 1.000000e+00 : f32
    %1 = vector.broadcast %cst : f32 to vector<8x128xf32>
    %2 = arith.addf %0, %1 : vector<8x128xf32>
    %c0_1 = arith.constant 0 : index
    %c0_2 = arith.constant 0 : index
    %3 = vector.load %arg2[%c0_1, %c0_2] : memref<8x128xf32, #tpu.memory_space<vmem>>, vector<8x128xf32>
    tpu.vector_store %arg2[%c0_1, %c0_2], %2 {strides = array<i32>} : memref<8x128xf32, #tpu.memory_space<vmem>>, vector<8x128xf32>,
    return
  }
  func.func @transform_0(%arg0: i32) -> (i32, i32) {
    %c0_i32 = arith.constant 0 : i32
    %c0_i32_0 = arith.constant 0 : i32
    %c0_i32_1 = arith.constant 0 : i32
    return %c0_i32, %c0_i32_0 : i32, i32
  }
  func.func @transform_1(%arg0: i32) -> (i32, i32) {
    %c0_i32 = arith.constant 0 : i32
    %c0_i32_0 = arith.constant 0 : i32
    %c0_i32_1 = arith.constant 0 : i32
    return %c0_i32, %c0_i32_0 : i32, i32
  }
}

module attributes {stable_mosaic.version = 11 : i64} {
  func.func @ln_qkv_split_kernel(%arg0: i32, %arg1: i32, %arg2: memref<1x8x32xf32, #tpu.memory_space<vmem>>, %arg3: memref<1x32xf32, #tpu.memory_space<vmem>>, %arg4: memref<1x32xf32, #tpu.memory_space<vmem>>, %arg5: memref<32x96xbf16, #tpu.memory_space<vmem>>, %arg6: memref<1x96xf32, #tpu.memory_space<vmem>>, %arg7: memref<1x4x8x8xbf16, #tpu.memory_space<vmem>>, %arg8: memref<1x4x8x8xbf16, #tpu.memory_space<vmem>>, %arg9: memref<1x4x8x8xbf16, #tpu.memory_space<vmem>>) attributes {dimension_semantics = [#tpu.dimension_semantics<parallel>, #tpu.dimension_semantics<parallel>], iteration_bounds = array<i64: 2, 1>, scalar_prefetch = 0 : i64, scratch_operands = 0 : i64, tpu.core_type = #tpu.core_type<tc>, window_params = [{transform_indices = @transform_0, window_bounds = array<i64: 1, 8, 32>}, {pipeline_mode = #tpu.pipeline_mode<synchronous>, transform_indices = @transform_1, window_bounds = array<i64: 1, 32>}, {pipeline_mode = #tpu.pipeline_mode<synchronous>, transform_indices = @transform_2, window_bounds = array<i64: 1, 32>}, {pipeline_mode = #tpu.pipeline_mode<synchronous>, transform_indices = @transform_3, window_bounds = array<i64: 32, 96>}, {pipeline_mode = #tpu.pipeline_mode<synchronous>, transform_indices = @transform_4, window_bounds = array<i64: 1, 96>}, {transform_indices = @transform_5, window_bounds = array<i64: 1, 4, 8, 8>}, {transform_indices = @transform_6, window_bounds = array<i64: 1, 4, 8, 8>}, {transform_indices = @transform_7, window_bounds = array<i64: 1, 4, 8, 8>}]} {
    %c0 = arith.constant 0 : index
    %c0_0 = arith.constant 0 : index
    %c0_1 = arith.constant 0 : index
    %0 = vector.load %arg2[%c0, %c0_0, %c0_1] : memref<1x8x32xf32, #tpu.memory_space<vmem>>, vector<1x8x32xf32>
    %1 = vector.shape_cast %0 : vector<1x8x32xf32> to vector<8x32xf32>
    %c0_2 = arith.constant 0 : index
    %c0_3 = arith.constant 0 : index
    %2 = vector.load %arg3[%c0_2, %c0_3] : memref<1x32xf32, #tpu.memory_space<vmem>>, vector<1x32xf32>
    %c0_4 = arith.constant 0 : index
    %c0_5 = arith.constant 0 : index
    %3 = vector.load %arg4[%c0_4, %c0_5] : memref<1x32xf32, #tpu.memory_space<vmem>>, vector<1x32xf32>
    %cst = arith.constant dense<0.000000e+00> : vector<8xf32>
    %4 = vector.multi_reduction <add>, %1, %cst [1] : vector<8x32xf32> to vector<8xf32>
    %5 = vector.shape_cast %4 : vector<8xf32> to vector<8x1xf32>
    %cst_6 = arith.constant 3.200000e+01 : f32
    %6 = vector.broadcast %cst_6 : f32 to vector<8x1xf32>
    %7 = arith.divf %5, %6 : vector<8x1xf32>
    %8 = vector.broadcast %7 : vector<8x1xf32> to vector<8x32xf32>
    %9 = arith.subf %1, %8 : vector<8x32xf32>
    %10 = arith.mulf %9, %9 : vector<8x32xf32>
    %cst_7 = arith.constant dense<0.000000e+00> : vector<8xf32>
    %11 = vector.multi_reduction <add>, %10, %cst_7 [1] : vector<8x32xf32> to vector<8xf32>
    %12 = vector.shape_cast %11 : vector<8xf32> to vector<8x1xf32>
    %cst_8 = arith.constant 3.200000e+01 : f32
    %13 = vector.broadcast %cst_8 : f32 to vector<8x1xf32>
    %14 = arith.divf %12, %13 : vector<8x1xf32>
    %15 = vector.broadcast %7 : vector<8x1xf32> to vector<8x32xf32>
    %16 = arith.subf %1, %15 : vector<8x32xf32>
    %cst_9 = arith.constant 9.99999974E-6 : f32
    %17 = vector.broadcast %cst_9 : f32 to vector<8x1xf32>
    %18 = arith.addf %14, %17 : vector<8x1xf32>
    %19 = math.rsqrt %18 : vector<8x1xf32>
    %20 = vector.broadcast %19 : vector<8x1xf32> to vector<8x32xf32>
    %21 = arith.mulf %16, %20 : vector<8x32xf32>
    %22 = vector.broadcast %2 : vector<1x32xf32> to vector<8x32xf32>
    %23 = arith.mulf %21, %22 : vector<8x32xf32>
    %24 = vector.broadcast %3 : vector<1x32xf32> to vector<8x32xf32>
    %25 = arith.addf %23, %24 : vector<8x32xf32>
    %26 = arith.truncf %25 : vector<8x32xf32> to vector<8x32xbf16>
    %c0_10 = arith.constant 0 : index
    %c0_11 = arith.constant 0 : index
    %27 = vector.load %arg5[%c0_10, %c0_11] : memref<32x96xbf16, #tpu.memory_space<vmem>>, vector<32x96xbf16>
    %cst_12 = arith.constant dense<0.000000e+00> : vector<8x96xf32>
    %28 = tpu.matmul %26, %27, %cst_12 {dimension_numbers = #tpu.dot_dimension_numbers<[1], [0], [0], [1], [0, 0, 1, 1], [], []>} : vector<8x32xbf16>, vector<32x96xbf16>, vector<8x96xf32> -> vector<8x96xf32>
    %c0_13 = arith.constant 0 : index
    %c0_14 = arith.constant 0 : index
    %29 = vector.load %arg6[%c0_13, %c0_14] : memref<1x96xf32, #tpu.memory_space<vmem>>, vector<1x96xf32>
    %30 = vector.broadcast %29 : vector<1x96xf32> to vector<8x96xf32>
    %31 = arith.addf %28, %30 : vector<8x96xf32>
    %32 = vector.extract_strided_slice %31 {offsets = [0, 0], sizes = [8, 8], strides = [1, 1]} : vector<8x96xf32> to vector<8x8xf32>
    %33 = arith.truncf %32 : vector<8x8xf32> to vector<8x8xbf16>
    %c0_15 = arith.constant 0 : index
    %c0_16 = arith.constant 0 : index
    %c0_17 = arith.constant 0 : index
    %c0_18 = arith.constant 0 : index
    %34 = vector.load %arg7[%c0_15, %c0_16, %c0_17, %c0_18] : memref<1x4x8x8xbf16, #tpu.memory_space<vmem>>, vector<1x1x8x8xbf16>
    %35 = vector.shape_cast %34 : vector<1x1x8x8xbf16> to vector<8x8xbf16>
    %36 = vector.shape_cast %33 : vector<8x8xbf16> to vector<1x1x8x8xbf16>
    tpu.vector_store %arg7[%c0_15, %c0_16, %c0_17, %c0_18], %36 {strides = array<i32>} : memref<1x4x8x8xbf16, #tpu.memory_space<vmem>>, vector<1x1x8x8xbf16>,
    %37 = vector.extract_strided_slice %31 {offsets = [0, 32], sizes = [8, 8], strides = [1, 1]} : vector<8x96xf32> to vector<8x8xf32>
    %38 = arith.truncf %37 : vector<8x8xf32> to vector<8x8xbf16>
    %c0_19 = arith.constant 0 : index
    %c0_20 = arith.constant 0 : index
    %c0_21 = arith.constant 0 : index
    %c0_22 = arith.constant 0 : index
    %39 = vector.load %arg8[%c0_19, %c0_20, %c0_21, %c0_22] : memref<1x4x8x8xbf16, #tpu.memory_space<vmem>>, vector<1x1x8x8xbf16>
    %40 = vector.shape_cast %39 : vector<1x1x8x8xbf16> to vector<8x8xbf16>
    %41 = vector.shape_cast %38 : vector<8x8xbf16> to vector<1x1x8x8xbf16>
    tpu.vector_store %arg8[%c0_19, %c0_20, %c0_21, %c0_22], %41 {strides = array<i32>} : memref<1x4x8x8xbf16, #tpu.memory_space<vmem>>, vector<1x1x8x8xbf16>,
    %42 = vector.extract_strided_slice %31 {offsets = [0, 64], sizes = [8, 8], strides = [1, 1]} : vector<8x96xf32> to vector<8x8xf32>
    %43 = arith.truncf %42 : vector<8x8xf32> to vector<8x8xbf16>
    %c0_23 = arith.constant 0 : index
    %c0_24 = arith.constant 0 : index
    %c0_25 = arith.constant 0 : index
    %c0_26 = arith.constant 0 : index
    %44 = vector.load %arg9[%c0_23, %c0_24, %c0_25, %c0_26] : memref<1x4x8x8xbf16, #tpu.memory_space<vmem>>, vector<1x1x8x8xbf16>
    %45 = vector.shape_cast %44 : vector<1x1x8x8xbf16> to vector<8x8xbf16>
    %46 = vector.shape_cast %43 : vector<8x8xbf16> to vector<1x1x8x8xbf16>
    tpu.vector_store %arg9[%c0_23, %c0_24, %c0_25, %c0_26], %46 {strides = array<i32>} : memref<1x4x8x8xbf16, #tpu.memory_space<vmem>>, vector<1x1x8x8xbf16>,
    %47 = vector.extract_strided_slice %31 {offsets = [0, 8], sizes = [8, 8], strides = [1, 1]} : vector<8x96xf32> to vector<8x8xf32>
    %48 = arith.truncf %47 : vector<8x8xf32> to vector<8x8xbf16>
    %c0_27 = arith.constant 0 : index
    %c1 = arith.constant 1 : index
    %c0_28 = arith.constant 0 : index
    %c0_29 = arith.constant 0 : index
    %49 = vector.load %arg7[%c0_27, %c1, %c0_28, %c0_29] : memref<1x4x8x8xbf16, #tpu.memory_space<vmem>>, vector<1x1x8x8xbf16>
    %50 = vector.shape_cast %49 : vector<1x1x8x8xbf16> to vector<8x8xbf16>
    %51 = vector.shape_cast %48 : vector<8x8xbf16> to vector<1x1x8x8xbf16>
    tpu.vector_store %arg7[%c0_27, %c1, %c0_28, %c0_29], %51 {strides = array<i32>} : memref<1x4x8x8xbf16, #tpu.memory_space<vmem>>, vector<1x1x8x8xbf16>,
    %52 = vector.extract_strided_slice %31 {offsets = [0, 40], sizes = [8, 8], strides = [1, 1]} : vector<8x96xf32> to vector<8x8xf32>
    %53 = arith.truncf %52 : vector<8x8xf32> to vector<8x8xbf16>
    %c0_30 = arith.constant 0 : index
    %c1_31 = arith.constant 1 : index
    %c0_32 = arith.constant 0 : index
    %c0_33 = arith.constant 0 : index
    %54 = vector.load %arg8[%c0_30, %c1_31, %c0_32, %c0_33] : memref<1x4x8x8xbf16, #tpu.memory_space<vmem>>, vector<1x1x8x8xbf16>
    %55 = vector.shape_cast %54 : vector<1x1x8x8xbf16> to vector<8x8xbf16>
    %56 = vector.shape_cast %53 : vector<8x8xbf16> to vector<1x1x8x8xbf16>
    tpu.vector_store %arg8[%c0_30, %c1_31, %c0_32, %c0_33], %56 {strides = array<i32>} : memref<1x4x8x8xbf16, #tpu.memory_space<vmem>>, vector<1x1x8x8xbf16>,
    %57 = vector.extract_strided_slice %31 {offsets = [0, 72], sizes = [8, 8], strides = [1, 1]} : vector<8x96xf32> to vector<8x8xf32>
    %58 = arith.truncf %57 : vector<8x8xf32> to vector<8x8xbf16>
    %c0_34 = arith.constant 0 : index
    %c1_35 = arith.constant 1 : index
    %c0_36 = arith.constant 0 : index
    %c0_37 = arith.constant 0 : index
    %59 = vector.load %arg9[%c0_34, %c1_35, %c0_36, %c0_37] : memref<1x4x8x8xbf16, #tpu.memory_space<vmem>>, vector<1x1x8x8xbf16>
    %60 = vector.shape_cast %59 : vector<1x1x8x8xbf16> to vector<8x8xbf16>
    %61 = vector.shape_cast %58 : vector<8x8xbf16> to vector<1x1x8x8xbf16>
    tpu.vector_store %arg9[%c0_34, %c1_35, %c0_36, %c0_37], %61 {strides = array<i32>} : memref<1x4x8x8xbf16, #tpu.memory_space<vmem>>, vector<1x1x8x8xbf16>,
    %62 = vector.extract_strided_slice %31 {offsets = [0, 16], sizes = [8, 8], strides = [1, 1]} : vector<8x96xf32> to vector<8x8xf32>
    %63 = arith.truncf %62 : vector<8x8xf32> to vector<8x8xbf16>
    %c0_38 = arith.constant 0 : index
    %c2 = arith.constant 2 : index
    %c0_39 = arith.constant 0 : index
    %c0_40 = arith.constant 0 : index
    %64 = vector.load %arg7[%c0_38, %c2, %c0_39, %c0_40] : memref<1x4x8x8xbf16, #tpu.memory_space<vmem>>, vector<1x1x8x8xbf16>
    %65 = vector.shape_cast %64 : vector<1x1x8x8xbf16> to vector<8x8xbf16>
    %66 = vector.shape_cast %63 : vector<8x8xbf16> to vector<1x1x8x8xbf16>
    tpu.vector_store %arg7[%c0_38, %c2, %c0_39, %c0_40], %66 {strides = array<i32>} : memref<1x4x8x8xbf16, #tpu.memory_space<vmem>>, vector<1x1x8x8xbf16>,
    %67 = vector.extract_strided_slice %31 {offsets = [0, 48], sizes = [8, 8], strides = [1, 1]} : vector<8x96xf32> to vector<8x8xf32>
    %68 = arith.truncf %67 : vector<8x8xf32> to vector<8x8xbf16>
    %c0_41 = arith.constant 0 : index
    %c2_42 = arith.constant 2 : index
    %c0_43 = arith.constant 0 : index
    %c0_44 = arith.constant 0 : index
    %69 = vector.load %arg8[%c0_41, %c2_42, %c0_43, %c0_44] : memref<1x4x8x8xbf16, #tpu.memory_space<vmem>>, vector<1x1x8x8xbf16>
    %70 = vector.shape_cast %69 : vector<1x1x8x8xbf16> to vector<8x8xbf16>
    %71 = vector.shape_cast %68 : vector<8x8xbf16> to vector<1x1x8x8xbf16>
    tpu.vector_store %arg8[%c0_41, %c2_42, %c0_43, %c0_44], %71 {strides = array<i32>} : memref<1x4x8x8xbf16, #tpu.memory_space<vmem>>, vector<1x1x8x8xbf16>,
    %72 = vector.extract_strided_slice %31 {offsets = [0, 80], sizes = [8, 8], strides = [1, 1]} : vector<8x96xf32> to vector<8x8xf32>
    %73 = arith.truncf %72 : vector<8x8xf32> to vector<8x8xbf16>
    %c0_45 = arith.constant 0 : index
    %c2_46 = arith.constant 2 : index
    %c0_47 = arith.constant 0 : index
    %c0_48 = arith.constant 0 : index
    %74 = vector.load %arg9[%c0_45, %c2_46, %c0_47, %c0_48] : memref<1x4x8x8xbf16, #tpu.memory_space<vmem>>, vector<1x1x8x8xbf16>
    %75 = vector.shape_cast %74 : vector<1x1x8x8xbf16> to vector<8x8xbf16>
    %76 = vector.shape_cast %73 : vector<8x8xbf16> to vector<1x1x8x8xbf16>
    tpu.vector_store %arg9[%c0_45, %c2_46, %c0_47, %c0_48], %76 {strides = array<i32>} : memref<1x4x8x8xbf16, #tpu.memory_space<vmem>>, vector<1x1x8x8xbf16>,
    %77 = vector.extract_strided_slice %31 {offsets = [0, 24], sizes = [8, 8], strides = [1, 1]} : vector<8x96xf32> to vector<8x8xf32>
    %78 = arith.truncf %77 : vector<8x8xf32> to vector<8x8xbf16>
    %c0_49 = arith.constant 0 : index
    %c3 = arith.constant 3 : index
    %c0_50 = arith.constant 0 : index
    %c0_51 = arith.constant 0 : index
    %79 = vector.load %arg7[%c0_49, %c3, %c0_50, %c0_51] : memref<1x4x8x8xbf16, #tpu.memory_space<vmem>>, vector<1x1x8x8xbf16>
    %80 = vector.shape_cast %79 : vector<1x1x8x8xbf16> to vector<8x8xbf16>
    %81 = vector.shape_cast %78 : vector<8x8xbf16> to vector<1x1x8x8xbf16>
    tpu.vector_store %arg7[%c0_49, %c3, %c0_50, %c0_51], %81 {strides = array<i32>} : memref<1x4x8x8xbf16, #tpu.memory_space<vmem>>, vector<1x1x8x8xbf16>,
    %82 = vector.extract_strided_slice %31 {offsets = [0, 56], sizes = [8, 8], strides = [1, 1]} : vector<8x96xf32> to vector<8x8xf32>
    %83 = arith.truncf %82 : vector<8x8xf32> to vector<8x8xbf16>
    %c0_52 = arith.constant 0 : index
    %c3_53 = arith.constant 3 : index
    %c0_54 = arith.constant 0 : index
    %c0_55 = arith.constant 0 : index
    %84 = vector.load %arg8[%c0_52, %c3_53, %c0_54, %c0_55] : memref<1x4x8x8xbf16, #tpu.memory_space<vmem>>, vector<1x1x8x8xbf16>
    %85 = vector.shape_cast %84 : vector<1x1x8x8xbf16> to vector<8x8xbf16>
    %86 = vector.shape_cast %83 : vector<8x8xbf16> to vector<1x1x8x8xbf16>
    tpu.vector_store %arg8[%c0_52, %c3_53, %c0_54, %c0_55], %86 {strides = array<i32>} : memref<1x4x8x8xbf16, #tpu.memory_space<vmem>>, vector<1x1x8x8xbf16>,
    %87 = vector.extract_strided_slice %31 {offsets = [0, 88], sizes = [8, 8], strides = [1, 1]} : vector<8x96xf32> to vector<8x8xf32>
    %88 = arith.truncf %87 : vector<8x8xf32> to vector<8x8xbf16>
    %c0_56 = arith.constant 0 : index
    %c3_57 = arith.constant 3 : index
    %c0_58 = arith.constant 0 : index
    %c0_59 = arith.constant 0 : index
    %89 = vector.load %arg9[%c0_56, %c3_57, %c0_58, %c0_59] : memref<1x4x8x8xbf16, #tpu.memory_space<vmem>>, vector<1x1x8x8xbf16>
    %90 = vector.shape_cast %89 : vector<1x1x8x8xbf16> to vector<8x8xbf16>
    %91 = vector.shape_cast %88 : vector<8x8xbf16> to vector<1x1x8x8xbf16>
    tpu.vector_store %arg9[%c0_56, %c3_57, %c0_58, %c0_59], %91 {strides = array<i32>} : memref<1x4x8x8xbf16, #tpu.memory_space<vmem>>, vector<1x1x8x8xbf16>,
    return
  }
  func.func @transform_0(%arg0: i32, %arg1: i32) -> (i32, i32, i32) {
    %c0_i32 = arith.constant 0 : i32
    %c0_i32_0 = arith.constant 0 : i32
    return %arg0, %arg1, %c0_i32 : i32, i32, i32
  }
  func.func @transform_1(%arg0: i32, %arg1: i32) -> (i32, i32) {
    %c0_i32 = arith.constant 0 : i32
    %c0_i32_0 = arith.constant 0 : i32
    %c0_i32_1 = arith.constant 0 : i32
    return %c0_i32, %c0_i32_0 : i32, i32
  }
  func.func @transform_2(%arg0: i32, %arg1: i32) -> (i32, i32) {
    %c0_i32 = arith.constant 0 : i32
    %c0_i32_0 = arith.constant 0 : i32
    %c0_i32_1 = arith.constant 0 : i32
    return %c0_i32, %c0_i32_0 : i32, i32
  }
  func.func @transform_3(%arg0: i32, %arg1: i32) -> (i32, i32) {
    %c0_i32 = arith.constant 0 : i32
    %c0_i32_0 = arith.constant 0 : i32
    %c0_i32_1 = arith.constant 0 : i32
    return %c0_i32, %c0_i32_0 : i32, i32
  }
  func.func @transform_4(%arg0: i32, %arg1: i32) -> (i32, i32) {
    %c0_i32 = arith.constant 0 : i32
    %c0_i32_0 = arith.constant 0 : i32
    %c0_i32_1 = arith.constant 0 : i32
    return %c0_i32, %c0_i32_0 : i32, i32
  }
  func.func @transform_5(%arg0: i32, %arg1: i32) -> (i32, i32, i32, i32) {
    %c0_i32 = arith.constant 0 : i32
    %c0_i32_0 = arith.constant 0 : i32
    %c0_i32_1 = arith.constant 0 : i32
    return %arg0, %c0_i32, %arg1, %c0_i32_0 : i32, i32, i32, i32
  }
  func.func @transform_6(%arg0: i32, %arg1: i32) -> (i32, i32, i32, i32) {
    %c0_i32 = arith.constant 0 : i32
    %c0_i32_0 = arith.constant 0 : i32
    %c0_i32_1 = arith.constant 0 : i32
    return %arg0, %c0_i32, %arg1, %c0_i32_0 : i32, i32, i32, i32
  }
  func.func @transform_7(%arg0: i32, %arg1: i32) -> (i32, i32, i32, i32) {
    %c0_i32 = arith.constant 0 : i32
    %c0_i32_0 = arith.constant 0 : i32
    %c0_i32_1 = arith.constant 0 : i32
    return %arg0, %c0_i32, %arg1, %c0_i32_0 : i32, i32, i32, i32
  }
}

</mosaic_0001>

<bundles_post_ra>
// kernel: tpu_custom_call.1
= control target key start
LH: loop header
LB: loop body
LE: loop exit
PB: predicated region body
PF: predicated region fallthrough
CT: control target
= control target key end

     0   :  { %6 = vsyncpa [#allocation3], 0  ;;  %s305_s0 = inlined_call_operand.hbm [shape: f32[8,128], index: 0, kind: input, shape index: {}]   ;;  %s306_s1 = inlined_call_operand.hbm [shape: f32[8,128], index: 1, kind: output, shape index: {}]  }
   0x1   :  { %7 = vsyncpa [#allocation4], 0  ;;  %s258_s6 = smov 0  }
   0x2 LB: > { %s145_s7 = sadd.s32 4294967295, %s244_s6   ;;  %p146_p0 = scmp.ge.s32.totalorder %s244_s6, 1  ;;  %s244_s6 = sphi %s258_s6, %s13_s6  }
   0x3   : > { %p60_p1 = scmp.lt.s32.totalorder %s244_s6, 3  ;;  %p270_p3 = scmp.eq.s32.totalorder %s145_s7, 0 }
   0x4   : > { %s246_s10 = smov [#allocation2]  }
   0x5   : > { %p266_p2 = pnand %p146_p0, %p60_p1  ;;  %s73_s11 = sshll.u32 %s246_s10, 4  ;;  %s74_s11 = int_to_ptr.vmem [resolvable:$true] %s73_s11 }
   0x6   : > { %s191_s12 = scalar_lea.vmem %s74_s11, 128  ;;  %p199_p10 = scmp.lt.s32.totalorder %s74_s11, %s74_s11 }
   0x7   : > { %p162_p4 = pneg %p266_p2  ;;  %p192_p7 = scmp.ne.s32.totalorder %s74_s11, %s191_s12 }
   0x8   : > { %p200_p11 = scmp.lt.s32.totalorder %s191_s12, %s191_s12 }
   0x9   : > { %p163_p5 = pnand %p270_p3, %p162_p4 }
   0xa   : > { %p201_p12 = por %p200_p11, %p199_p10 }
   0xb   : > { %p182_p6 = pneg %p163_p5 }
   0xd   : > { %p194_p8 = pnand %p192_p7, %p182_p6 }
   0xf   : > { %p195_p9 = pneg %p194_p8 }
  0x11   : > { %p202_p13 = pnand %p201_p12, %p195_p9 }
  0x13   : > { %205 = shalt.err (!%p202_p13)
}
  0x14   : > { %165 = dma.hbm_to_vmem [thread:$0]  (!%p163_p5), %s305_s0, 128, %s74_s11, [#allocation3]  }
  0x15   : > { %86 = sbr.rel (%p266_p2) target bundleno = 42 (0x2a), region = 24 }
  0x1a   : > { %235 = dma.done.wait (%p270_p3), [#allocation3], 128  }
  0x1b   : > { %237 = vsyncadd (%p270_p3), [#allocation3], 4294967168  ;;  %s247_s15 = smov [#allocation5]   ;;  %v96_v0 = vld [vmem:[#allocation2] sm:$0xff]  ;;  %p287_p0 = scmp.eq.s32.totalorder %s145_s7, 1 }
  0x1c   : > { %s106_s16 = sshll.u32 %s247_s15, 4  ;;  %v97_v1 = vadd.f32 1.0, %v96_v0  ;;  %s107_s16 = int_to_ptr.vmem [resolvable:$true] %s106_s16 }
  0x1d   : > { %s206_s18 = scalar_lea.vmem %s107_s16, 128  ;;  %p213_p5 = scmp.lt.s32.totalorder %s107_s16, %s107_s16 }
  0x1e   : > { %98 = vst [vmem:[#allocation5] sm:$0xff] %v97_v1  ;;  %p207_p1 = scmp.ne.s32.totalorder %s107_s16, %s206_s18  ;;  %p214_p6 = scmp.lt.s32.totalorder %s206_s18, %s206_s18 }
  0x20   : > { %p208_p2 = pnand %p207_p1, %p287_p0  ;;  %p215_p7 = por %p214_p6, %p213_p5 }
  0x22   : > { %p209_p4 = pneg %p208_p2 }
  0x24   : > { %p216_p3 = pnand %p215_p7, %p209_p4 }
  0x26   : > { %219 = shalt.err (!%p216_p3)
}
  0x27   : > { %159 = dma.vmem_to_hbm [thread:$0]  (%p287_p0), %s107_s16, 128, %s306_s1, [#allocation4]  }
  0x28   : > { %239 = dma.done.wait (%p287_p0), [#allocation4], 128  }
  0x29   : > { %241 = vsyncadd (%p287_p0), [#allocation4], 4294967168 }
  0x2a PF: > { %s13_s6 = sadd.s32 1, %s244_s6  }
  0x2b   : > { %p10_p8 = scmp.ge.s32.totalorder %s13_s6, 4  }
  0x2d   :  { %12 = sbr.rel (!%p10_p8) target bundleno = 2 (0x2), region = 53 }
  0x32   :  { %119 = vsyncpa [#allocation3], 1 }
  0x33   :  { %121 = vsyncpa [#allocation3 + $0x1], 1 }
  0x34   :  { %122 = vsyncpa [#allocation4], 1 }
  0x35   :  { %124 = vsyncpa [#allocation4 + $0x1], 1 }

// kernel: tpu_custom_call.1
= control target key start
LH: loop header
LB: loop body
LE: loop exit
PB: predicated region body
PF: predicated region fallthrough
CT: control target
= control target key end

     0   :  { %s1437_s0 = inlined_call_operand.hbm [shape: f32[2,8,32], index: 0, kind: input, shape index: {}]   ;;  %s1438_s1 = inlined_call_operand.vmem [shape: f32[1,32], index: 1, kind: input, shape index: {}]   ;;  %s1439_s2 = inlined_call_operand.vmem [shape: f32[1,32], index: 2, kind: input, shape index: {}]   ;;  %s1440_s3 = inlined_call_operand.hbm [shape: bf16[32,96], index: 3, kind: input, shape index: {}]   ;;  %s1441_s4 = inlined_call_operand.vmem [shape: f32[1,96], index: 4, kind: input, shape index: {}]   ;;  %s1442_s5 = inlined_call_operand.hbm [shape: bf16[2,4,8,8], index: 5, kind: output, shape index: {0}]   ;;  %s1443_s6 = inlined_call_operand.hbm [shape: bf16[2,4,8,8], index: 6, kind: output, shape index: {1}]   ;;  %s1444_s7 = inlined_call_operand.hbm [shape: bf16[2,4,8,8], index: 7, kind: output, shape index: {2}]  }
   0x1   :  { %1450 = sst [smem:[#allocation18_spill]] %s1440_s3 }
   0x2   :  { %13 = vsyncpa [#allocation3], 0 }
   0x3   :  { %15 = vsyncpa [#allocation3 + $0x1], 0 }
   0x4   :  { %16 = vsyncpa [#allocation6], 0 }
   0x5   :  { %17 = vsyncpa [#allocation4], 0 }
   0x6   :  { %19 = vsyncpa [#allocation4 + $0x1], 0 }
   0x7   :  { %20 = vsyncpa [#allocation9], 0 }
   0x8   :  { %22 = vsyncpa [#allocation9 + $0x1], 0  ;;  %s1140_s24 = smov 0   ;;  %s1142_s25 = smov 0  }
   0x9   :  { %s1144_s26 = smov 0   ;;  %s1146_s27 = smov 0  }
   0xa   :  { %s1148_s28 = smov 0   ;;  %s1150_s29 = smov 0  }
   0xb LB: > { %1451 = sst [smem:[#allocation15_spill]] %s1073_s28  ;;  %s1171_s30 = sadd.s32 4294967295, %s1077_s29   ;;  %s1077_s29 = sphi %s1150_s29, %s28_s29   ;;  %s1073_s28 = sphi %s1148_s28, %s1470_s28   ;;  %s1069_s27 = sphi %s1146_s27, %s1469_s27   ;;  %s1065_s26 = sphi %s1144_s26, %s1473_s26   ;;  %s1061_s25 = sphi %s1142_s25, %s1472_s25   ;;  %s1057_s24 = sphi %s1140_s24, %s1471_s24  }
   0xc   : > { %s1445_s8 = sadd.s32 4294967294, %s1077_s29   ;;  %p62_p0 = scmp.ne.s32.totalorder %s1061_s25, %s1057_s24 }
   0xd   : > { %p1449_p1 = scmp.eq.s32.totalorder %s1171_s30, 0  ;;  %p178_p3 = scmp.eq.s32.totalorder %s1445_s8, 1 }
   0xe   : > { %p727_p5 = scmp.ge.s32.totalorder %s1077_s29, 1  ;;  %p241_p7 = scmp.lt.s32.totalorder %s1077_s29, 3 }
   0xf   : > { %p1182_p4 = por %p1449_p1, %p62_p0  ;;  %p1187_p6 = por %p178_p3, %p62_p0 }
  0x10   : > { %p1192_p8 = pnand %p727_p5, %p241_p7  ;;  %s1079_s12 = smov [#allocation5]  }
  0x11   : > { %s1453_s10 = scalar_select %p1187_p6, 1, 0 }
  0x12   : > { %s259_s13 = sshll.u32 %s1079_s12, 4  ;;  %p792_p9 = pneg %p1192_p8  ;;  %s260_s13 = int_to_ptr.vmem [resolvable:$true] %s259_s13 }
  0x13   : > { %1454 = sst [smem:[#allocation16_spill]] %s1453_s10  ;;  %s40_s15 = sadd.s32 1, %s1073_s28 }
  0x14   : > { %p1201_p11 = pnand %p792_p9, %p1449_p1  ;;  %s894_s16 = scalar_lea.vmem %s260_s13, 256 }
  0x15   : > { %p895_p13 = scmp.ne.s32.totalorder %s260_s13, %s894_s16  ;;  %p902_p5 = scmp.lt.s32.totalorder %s260_s13, %s260_s13 }
  0x16   : > { %p885_p12 = pneg %p1201_p11  ;;  %p903_p7 = scmp.lt.s32.totalorder %s894_s16, %s894_s16 }
  0x18   : > { %p897_p0 = pnand %p895_p13, %p885_p12  ;;  %p904_p2 = por %p903_p7, %p902_p5 }
  0x1a   : > { %p898_p3 = pneg %p897_p0 }
  0x1c   : > { %p905_p6 = pnand %p904_p2, %p898_p3 }
  0x1e   : > { %908 = shalt.err (!%p905_p6)
}
  0x1f   : > { %s1080_s17 = smov 64   ;;  %s1081_s18 = smov 4  }
  0x20   : > { %s1457_s3 = sld [smem:[#allocation18_spill]]  ;;  %p42_p2 = scmp.ge.s32.totalorder %s40_s15, 2 }
  0x21   : > { %s49_s21 = sadd.s32 1, %s1065_s26  ;;  %p56_p6 = scmp.ne.s32.totalorder %s1065_s26, %s1061_s25 }
  0x22   : > { %p57_p9 = scmp.eq.s32.totalorder %s1077_s29, 0  ;;  %s1475_s15 = smov (%p42_p2, %s40_s15), 0 }
  0x23   : > { %1458 = sst [smem:[#allocation17_spill]] %s1475_s15  ;;  %p1460_p13 = scmp.eq.s32.totalorder %s1171_s30, 1 }
  0x24   : > { %p1219_p12 = por %p57_p9, %p56_p6  ;;  %s44_s12 = ssub.s32 %s1073_s28, %s1475_s15 }
  0x25   : > { %p1225_p0 = por %p1460_p13, %p56_p6  ;;  %p811_p3 = scmp.lt.s32.totalorder %s1077_s29, 2 }
  0x26   : > { %795 = dma.hbm_to_vmem [thread:$0]  (!%p1201_p11), %s1457_s3, 256, %s260_s13, [#allocation6], %s1080_s17, %s1080_s17, %s1081_s18  }
  0x27   : > { %p47_p11 = scmp.eq.s32.totalorder %s44_s12, 0  ;;  %s276_s13 = sand.u32 1, %s1065_s26  }
  0x28   : > { %s730_s14 = sshll.u32 %s276_s13, 3  ;;  %s731_s17 = sshll.u32 %s1073_s28, 7 }
  0x29   : > { %s1234_s16 = scalar_select %p47_p11, %s1065_s26, %s49_s21  }
  0x2a   : > { %s286_s20 = scalar_lea.hbm %s1437_s0, %s731_s17  ;;  %s280_s8 = scalar_lea.vmem [#allocation2], %s730_s14 }
  0x2b   : > { %s288_s3 = sshll.u32 %s280_s8, 4  ;;  %p1242_p5 = pnand %p811_p3, %p1219_p12  ;;  %s289_s3 = int_to_ptr.vmem [resolvable:$true] %s288_s3 }
  0x2c   : > { %s277_s15 = scalar_lea.sflag [#allocation3], %s276_s13  ;;  %s922_s12 = scalar_lea.vmem %s289_s3, 128 }
  0x2d   : > { %p911_p7 = pneg %p1242_p5  ;;  %p923_p2 = scmp.ne.s32.totalorder %s289_s3, %s922_s12 }
  0x2e   : > { %s1082_s21 = smov [#allocation2]  }
  0x2f   : > { %p925_p6 = pnand %p923_p2, %p911_p7  ;;  %s927_s28 = sshll.u32 %s1082_s21, 4  ;;  %s928_s28 = int_to_ptr.vmem [resolvable:$false] %s927_s28 }
  0x30   : > { %s929_s17 = scalar_lea.vmem %s928_s28, 256  ;;  %p930_p13 = scmp.lt.s32.totalorder %s289_s3, %s928_s28 }
  0x31   : > { %p926_p9 = pneg %p925_p6  ;;  %p931_p11 = scmp.lt.s32.totalorder %s929_s17, %s922_s12 }
  0x33   : > { %p932_p10 = por %p931_p11, %p930_p13 }
  0x35   : > { %p933_p1 = pnand %p932_p10, %p926_p9 }
  0x37   : > { %936 = shalt.err (!%p933_p1)
}
  0x38   : > { %799 = dma.hbm_to_vmem [thread:$0]  (!%p1242_p5), %s286_s20, 128, %s289_s3, %s277_s15  }
  0x39   : > { %297 = sbr.rel (%p1192_p8) target bundleno = 757 (0x2f5), region = 40  ;;  %s1253_s8 = sand.u32 (!%p1192_p8), 1, %s1061_s25  }
  0x3a   : > { %s733_s22 = sshll.u32 (!%p1192_p8), %s1253_s8, 3  ;;  %s300_s13 = scalar_lea.sflag (!%p1192_p8), [#allocation3], %s1253_s8 }
  0x3b   : > { %s303_s14 = scalar_lea.vmem (!%p1192_p8), [#allocation2], %s733_s22 }
  0x3e   : > { %1040 = dma.done.wait (%p1182_p4), %s300_s13, 128  }
  0x3f   : > { %1042 = vsyncadd (%p1182_p4), %s300_s13, 4294967168  ;;  %p1463_p1 = scmp.eq.s32.totalorder %s1171_s30, 0 }
  0x41   : > { %1044 = dma.done.wait (%p1463_p1), [#allocation6], 256   ;;  %p1464_p10 = pmov %p1463_p1 }
  0x42   : > { %vm352_vm0 = vcmask 261120   ;;  %v349_v0 = vld [vmem:[%s303_s14] sm:$0xff]  ;;  %v879_v7 = vld [vmem:[#allocation5 + $0x8] sm:$0xff]   ;;  %v1083_v8 = vmov 0.0   ;;  %vm1084_vm1 = vmmov 0   ;;  %v880_v9 = vld [vmem:[#allocation5] sm:$0xff]  }
  0x43   : > { %1046 = vsyncadd (%p1464_p10), [#allocation6], 4294967040  ;;  %v353_v1 = vsel %vm352_vm0, %v349_v0, 0.0  ;;  %772 = vmatprep.subr.bf16.mxu0 %v1083_v8  ;;  %776 = vmatprep.mubr.msk.bf16.mxu0 %vm1084_vm1, %v1083_v8  ;;  %v738_v14 = vld [vmem:[%s1438_s1] ss:$0 sm:$0xff]  ;;  %s1278_s18 = sshll.u32 %s1253_s8, 4 }
  0x44   : > { %354 = vadd.xlane.f32.xlu0 %v353_v1  ;;  %773 = vmatpush3.bf16.msra.mxu0 %v879_v7  ;;  %v739_v16 = vld [vmem:[%s1439_s2] ss:$0 sm:$0xff]  ;;  %vm449_vm2 = vcmask 60416   ;;  %s1085_s19 = smov 80   ;;  %s1086_s20 = smov 96  }
  0x45   : > { %774 = vmatprep.subr.bf16.mxu0 %v1083_v8  ;;  %v740_v20 = vld [vmem:[%s1441_s4] ss:$0 sm:$0xff]  ;;  %s1281_s12 = scalar_lea.vmem [#allocation7], %s1278_s18  ;;  %s1087_s21 = smov 104  }
  0x46   : > { %s1088_s17 = smov 88   ;;  %s1089_s22 = smov 72  }
  0x47   : > { %s1090_s13 = smov 64   ;;  %s1091_s14 = smov 120  }
  0x48   : > { %775 = vmatpush3.bf16.msra.mxu0 %v880_v9  ;;  %s1092_s3 = smov 56   ;;  %s1093_s28 = smov 112  }
  0x49   : > { %s1094_s9 = smov 48   ;;  %s1095_s10 = smov 40  }
  0x4a   : > { %s340_s11 = scalar_lea.vmem [#allocation8], %s1278_s18 }
  0x4b   : > { %s549_s15 = sshll.u32 %s340_s11, 4  ;;  %s1296_s15 = int_to_ptr.vmem [resolvable:$true] %s549_s15 }
  0xcd   : > { %v355_v2 = vpop.xlane.xlu0 %354 }
  0xce   : > { %v357_v3 = vmul.f32 0.03125, %v355_v2 }
  0xd0   : > { %v358_v4 = vsub.f32 %v349_v0, %v357_v3 }
  0xd2   : > { %v359_v5 = vmul.f32 %v358_v4, %v358_v4 }
  0xd4   : > { %v360_v6 = vsel %vm352_vm0, %v359_v5, 0.0 }
  0xd5   : > { %361 = vadd.xlane.f32.xlu0 %v360_v6 }
 0x15e   : > { %v362_v10 = vpop.xlane.xlu0 %361 }
 0x15f   : > { %v363_v11 = vmul.f32 0.03125, %v362_v10 }
 0x161   : > { %v364_v12 = vadd.f32 1e-05, %v363_v11 }
 0x163   : > { %881 = vrsqrt.f32 %v364_v12 }
 0x170   : > { %v882_v13 = vpop.eup %881 }
 0x171   : > { %v366_v15 = vmul.f32 %v882_v13, %v358_v4 }
 0x173   : > { %v373_v17 = vmul.f32 %v738_v14, %v366_v15 }
 0x175   : > { %v380_v18 = vadd.f32 %v739_v16, %v373_v17 }
 0x177   : > { %v381_v19 = vpack.c.bf16 %v380_v18, %v380_v18 }
 0x179   : > { %777 = vmatmul.mubr.msk.bf16.vlgmr.msra.gmra.mxu0 %vm352_vm0, %v381_v19 }
 0x239   : > { %v442_v21 = vpop.f32.mrf.mxu0 }
 0x23a   : > { %v443_v22 = vadd.f32 %v740_v20, %v442_v21 }
 0x23b   : > { %v778_v23 = vpop.f32.mrf.mxu0 }
 0x23c   : > { %v448_v24 = vpack.c.bf16 %v443_v22, %v443_v22 }
 0x23d   : > { %v445_v25 = vpop.f32.mrf.mxu0 }
 0x23e   : > { %482 = vrot.lane.b32.xlu0 %v448_v24, %s1085_s19  ;;  %454 = vrot.lane.b32.xlu1 %v448_v24, %s1086_s20  ;;  %450 = vst.msk [vmem:[%s1281_s12] sm:$0xf] %vm449_vm2, %v448_v24  ;;  %s512_s19 = sand.u32 1, %s1171_s30   ;;  %s1291_s20 = sshll.u32 %s1069_s27, 8 }
 0x23f   : > { %v779_v26 = vpop.f32.mrf.mxu0  ;;  %s1305_s27 = scalar_lea.sflag [#allocation9], %s512_s19  ;;  %s937_s30 = scalar_lea.vmem %s1296_s15, 256 }
 0x240   : > { %p938_p4 = scmp.ne.s32.totalorder %s1296_s15, %s937_s30 }
 0x242   : > { %492 = vrot.lane.b32.xlu0 %v448_v24, %s1087_s21  ;;  %467 = vrot.lane.b32.xlu1 %v448_v24, %s1088_s17  ;;  %p939_p8 = pnand %p938_p4, %p1225_p0 }
 0x244   : > { %p940_p12 = pneg %p939_p8 }
 0x246   : > { %497 = vrot.lane.b32.xlu1 %v448_v24, %s1089_s22  ;;  %s1302_s22 = scalar_lea.hbm %s1443_s6, %s1291_s20 }
 0x24a   : > { %458 = vrot.lane.b32.xlu1 %v448_v24, %s1090_s13 }
 0x24e   : > { %462 = vrot.lane.b32.xlu1 %v448_v24, %s1091_s14  ;;  %s1096_s14 = smov [#allocation8]  }
 0x252   : > { %472 = vrot.lane.b32.xlu1 %v448_v24, %s1092_s3  ;;  %s941_s3 = sshll.u32 %s1096_s14, 4  ;;  %s942_s3 = int_to_ptr.vmem [resolvable:$false] %s941_s3 }
 0x253   : > { %p944_p3 = scmp.lt.s32.totalorder %s1296_s15, %s942_s3 }
 0x256   : > { %477 = vrot.lane.b32.xlu1 %v448_v24, %s1093_s28  ;;  %s943_s28 = scalar_lea.vmem %s942_s3, 512 }
 0x257   : > { %p945_p5 = scmp.lt.s32.totalorder %s943_s28, %s937_s30 }
 0x259   : > { %p946_p7 = por %p945_p5, %p944_p3 }
 0x25a   : > { %487 = vrot.lane.b32.xlu1 %v448_v24, %s1094_s9 }
 0x25b   : > { %p947_p2 = pnand %p946_p7, %p940_p12 }
 0x25e   : > { %502 = vrot.lane.b32.xlu1 %v448_v24, %s1095_s10 }
 0x2b0   : > { %v483_v27 = vpop.permute.xlu0 %482  ;;  %v455_v28 = vpop.permute.xlu1 %454 }
 0x2b1   : > { %749 = vst.msk [vmem:[%s340_s11 + $0x8] sm:$0xf] %vm449_vm2, %v483_v27  ;;  %457 = vst.msk [vmem:[%s340_s11] sm:$0xf] %vm449_vm2, %v455_v28 }
 0x2b4   : > { %v493_v29 = vpop.permute.xlu0 %492  ;;  %v468_v30 = vpop.permute.xlu1 %467 }
 0x2b5   : > { %751 = vst.msk [vmem:[%s1281_s12 + $0xc] sm:$0xf] %vm449_vm2, %v493_v29  ;;  %746 = vst.msk [vmem:[%s340_s11 + $0x4] sm:$0xf] %vm449_vm2, %v468_v30 }
 0x2b8   : > { %v498_v31 = vpop.permute.xlu1 %497 }
 0x2b9   : > { %752 = vst.msk [vmem:[%s340_s11 + $0xc] sm:$0xf] %vm449_vm2, %v498_v31 }
 0x2ba   : > { %950 = shalt.err (!%p947_p2)
}
 0x2bb   : > { %s951_s9 = scalar_lea.hbm %s1302_s22, 256  ;;  %s955_s19 = scalar_lea.hbm %s1443_s6, 512 }
 0x2bc   : > { %p952_p6 = scmp.ne.s32.totalorder %s1302_s22, %s951_s9  ;;  %p956_p11 = scmp.lt.s32.totalorder %s1302_s22, %s1443_s6 }
 0x2bd   : > { %p957_p1 = scmp.lt.s32.totalorder %s955_s19, %s951_s9 }
 0x2be   : > { %p953_p9 = pnand %p952_p6, %p1225_p0 }
 0x2bf   : > { %p958_p10 = por %p957_p1, %p956_p11 }
 0x2c0   : > { %p954_p13 = pneg %p953_p9 }
 0x2c2   : > { %p959_p4 = pnand %p958_p10, %p954_p13 }
 0x2c4   : > { %962 = shalt.err (!%p959_p4)
}
 0x2c5   : > { %s1097_s30 = smov 4   ;;  %v459_v32 = vpop.permute.xlu1 %458  ;;  %s1332_s14 = scalar_lea.vmem [#allocation10], %s1278_s18 }
 0x2c6   : > { %787 = dma.vmem_to_hbm [thread:$0]  (%p1225_p0), %s1296_s15, 256, %s1302_s22, %s1305_s27, %s1090_s13, %s1090_s13, %s1097_s30  }
 0x2c7   : > { %461 = vst.msk [vmem:[%s1332_s14] sm:$0xf] %vm449_vm2, %v459_v32  ;;  %s532_s3 = sshll.u32 %s1281_s12, 4  ;;  %s1347_s18 = scalar_lea.hbm %s1442_s5, %s1291_s20  ;;  %s1341_s3 = int_to_ptr.vmem [resolvable:$true] %s532_s3 }
 0x2c8   : > { %s508_s15 = scalar_lea.sflag [#allocation4], %s1253_s8  ;;  %s963_s22 = scalar_lea.vmem %s1341_s3, 256 }
 0x2c9   : > { %v463_v33 = vpop.permute.xlu1 %462  ;;  %p964_p8 = scmp.ne.s32.totalorder %s1341_s3, %s963_s22  ;;  %s1098_s10 = smov [#allocation7]  }
 0x2ca   : > { %745 = vst.msk [vmem:[%s1281_s12 + $0x4] sm:$0xf] %vm449_vm2, %v463_v33  ;;  %s967_s11 = sshll.u32 %s1098_s10, 4  ;;  %s968_s11 = int_to_ptr.vmem [resolvable:$false] %s967_s11 }
 0x2cb   : > { %p965_p12 = pnand %p964_p8, %p1225_p0  ;;  %s969_s19 = scalar_lea.vmem %s968_s11, 512 }
 0x2cc   : > { %p970_p5 = scmp.lt.s32.totalorder %s1341_s3, %s968_s11  ;;  %p971_p7 = scmp.lt.s32.totalorder %s969_s19, %s963_s22 }
 0x2cd   : > { %v473_v34 = vpop.permute.xlu1 %472  ;;  %p966_p3 = pneg %p965_p12 }
 0x2ce   : > { %747 = vst.msk [vmem:[%s1332_s14 + $0x4] sm:$0xf] %vm449_vm2, %v473_v34  ;;  %p972_p2 = por %p971_p7, %p970_p5 }
 0x2d0   : > { %p973_p6 = pnand %p972_p2, %p966_p3 }
 0x2d1   : > { %v478_v35 = vpop.permute.xlu1 %477 }
 0x2d2   : > { %748 = vst.msk [vmem:[%s1281_s12 + $0x8] sm:$0xf] %vm449_vm2, %v478_v35 }
 0x2d3   : > { %976 = shalt.err (!%p973_p6)
}
 0x2d4   : > { %s977_s12 = scalar_lea.hbm %s1347_s18, 256  ;;  %s981_s17 = scalar_lea.hbm %s1442_s5, 512 }
 0x2d5   : > { %p978_p9 = scmp.ne.s32.totalorder %s1347_s18, %s977_s12  ;;  %p982_p1 = scmp.lt.s32.totalorder %s1347_s18, %s1442_s5 }
 0x2d6   : > { %p983_p10 = scmp.lt.s32.totalorder %s981_s17, %s977_s12 }
 0x2d7   : > { %p979_p13 = pnand %p978_p9, %p1225_p0 }
 0x2d8   : > { %p984_p4 = por %p983_p10, %p982_p1 }
 0x2d9   : > { %p980_p11 = pneg %p979_p13 }
 0x2db   : > { %p985_p8 = pnand %p984_p4, %p980_p11 }
 0x2dd   : > { %988 = shalt.err (!%p985_p8)
}
 0x2de   : > { %786 = dma.vmem_to_hbm [thread:$0]  (%p1225_p0), %s1341_s3, 256, %s1347_s18, %s508_s15, %s1090_s13, %s1090_s13, %s1097_s30   ;;  %v488_v36 = vpop.permute.xlu1 %487 }
 0x2df   : > { %s566_s22 = sshll.u32 %s1332_s14, 4  ;;  %750 = vst.msk [vmem:[%s1332_s14 + $0x8] sm:$0xf] %vm449_vm2, %v488_v36  ;;  %s1384_s19 = scalar_lea.hbm %s1444_s7, %s1291_s20  ;;  %s1378_s22 = int_to_ptr.vmem [resolvable:$true] %s566_s22 }
 0x2e0   : > { %s989_s12 = scalar_lea.vmem %s1378_s22, 256  ;;  %s1099_s3 = smov [#allocation10]  }
 0x2e1   : > { %p990_p12 = scmp.ne.s32.totalorder %s1378_s22, %s989_s12  ;;  %s993_s18 = sshll.u32 %s1099_s3, 4  ;;  %s994_s18 = int_to_ptr.vmem [resolvable:$false] %s993_s18 }
 0x2e2   : > { %v503_v37 = vpop.permute.xlu1 %502  ;;  %s995_s15 = scalar_lea.vmem %s994_s18, 512  ;;  %p996_p7 = scmp.lt.s32.totalorder %s1378_s22, %s994_s18 }
 0x2e3   : > { %753 = vst.msk [vmem:[%s1332_s14 + $0xc] sm:$0xf] %vm449_vm2, %v503_v37  ;;  %p991_p3 = pnand %p990_p12, %p1225_p0  ;;  %p997_p2 = scmp.lt.s32.totalorder %s995_s15, %s989_s12 }
 0x2e5   : > { %p992_p5 = pneg %p991_p3  ;;  %p998_p6 = por %p997_p2, %p996_p7 }
 0x2e7   : > { %p999_p9 = pnand %p998_p6, %p992_p5 }
 0x2e9   : > { %1002 = shalt.err (!%p999_p9)
}
 0x2ea   : > { %s1003_s20 = scalar_lea.hbm %s1384_s19, 256  ;;  %s1007_s21 = scalar_lea.hbm %s1444_s7, 512 }
 0x2eb   : > { %p1004_p13 = scmp.ne.s32.totalorder %s1384_s19, %s1003_s20  ;;  %p1008_p10 = scmp.lt.s32.totalorder %s1384_s19, %s1444_s7 }
 0x2ec   : > { %p1009_p4 = scmp.lt.s32.totalorder %s1007_s21, %s1003_s20 }
 0x2ed   : > { %p1005_p11 = pnand %p1004_p13, %p1225_p0 }
 0x2ee   : > { %p1010_p8 = por %p1009_p4, %p1008_p10 }
 0x2ef   : > { %p1006_p1 = pneg %p1005_p11 }
 0x2f1   : > { %p1011_p12 = pnand %p1010_p8, %p1006_p1 }
 0x2f3   : > { %1014 = shalt.err (!%p1011_p12)
}
 0x2f4   : > { %788 = dma.vmem_to_hbm [thread:$0]  (%p1225_p0), %s1378_s22, 256, %s1384_s19, %s1305_s27, %s1090_s13, %s1090_s13, %s1097_s30  }
 0x2f5 PF: > { %s1465_s9 = sld [smem:[#allocation16_spill]]  ;;  %s581_s10 = sand.u32 1, %s1057_s24  }
 0x2f6   : > { %p1467_p5 = scmp.ge.s32.totalorder %s1077_s29, 2  ;;  %s582_s11 = scalar_lea.sflag [#allocation4], %s581_s10 }
 0x2fb   : > { %p1466_p3 = scmp.ne.s32.totalorder %s1465_s9, 0 }
 0x2fd   : > { %p801_p7 = pnand %p1467_p5, %p1466_p3 }
 0x2ff   : > { %p802_p2 = pneg %p801_p7 }
 0x301   : > { %1048 = dma.done.wait (%p802_p2), %s582_s11, 256  }
 0x302   : > { %1050 = vsyncadd (%p802_p2), %s582_s11, 4294967040  ;;  %s1468_s23 = sadd.s32 4294967294, %s1077_s29  }
 0x303   : > { %s590_s12 = sand.u32 1, %s1468_s23  }
 0x304   : > { %s591_s3 = scalar_lea.sflag [#allocation9], %s590_s12 }
 0x305   : > { %1052 = dma.done.wait (%p802_p2), %s591_s3, 512  }
 0x306   : > { %1054 = vsyncadd (%p802_p2), %s591_s3, 4294966784  ;;  %s28_s29 = sadd.s32 1, %s1077_s29   ;;  %s1469_s27 = sld [smem:[#allocation15_spill]] }
 0x307   : > { %p25_p0 = scmp.ge.s32.totalorder %s28_s29, 4   ;;  %s1470_s28 = sld [smem:[#allocation17_spill]] }
 0x308   : > { %s1471_s24 = smov %s1061_s25  ;;  %s1472_s25 = smov %s1065_s26 }
 0x309   : > { %s1473_s26 = smov %s1234_s16  ;;  %27 = sbr.rel (!%p25_p0) target bundleno = 11 (0xb), region = 130 }
 0x30e   :  { %605 = vsyncpa [#allocation3], 1 }
 0x30f   :  { %607 = vsyncpa [#allocation3 + $0x1], 1 }
 0x310   :  { %608 = vsyncpa [#allocation6], 1 }
 0x311   :  { %609 = vsyncpa [#allocation4], 1 }
 0x312   :  { %611 = vsyncpa [#allocation4 + $0x1], 1 }
 0x313   :  { %612 = vsyncpa [#allocation9], 1 }
 0x314   :  { %614 = vsyncpa [#allocation9 + $0x1], 1 }

</bundles_post_ra>
